<compile_context>
chip_gen: v5e
topology: v5e:2x2
jax: 0.10.0
libtpu: 0.0.40
codegen_flags: <defaults>
</compile_context>

<pallas_src>
import functools

import jax
import jax.numpy as jnp
from jax.experimental import pallas as pl
from jax.experimental.pallas import tpu as pltpu


# =============================================================================
# Fused kernel: one grid step = one transformer layer of one batch element.
# =============================================================================
def fused_transformer_kernel(
    x_ref,       # (1, N, D)          input dtype
    vecs_ref,    # (1, 6, D)          f32: ln1_g, ln1_b, bo, ln2_g, ln2_b, b2
    b1_ref,      # (1, 1, M)          f32
    wqkv_ref,    # (1, 3H, D, Dh)     bf16 (softmax scale folded into q rows)
    wo_ref,      # (1, H, Dh, D)      bf16
    w1_ref,      # (1, D, M)          bf16
    w2_ref,      # (1, M, D)          bf16
    o_ref,       # (1, N, D)          output dtype
    act_ref,     # (N, D)             f32 scratch: residual stream across layers
    *,
    heads,
):
    layer = pl.program_id(1)
    n_layers = pl.num_programs(1)
    eps = 1e-5
    inv_sqrt2 = 0.7071067811865476

    # Load the input activation once per batch element (first layer only).
    @pl.when(layer == 0)
    def _():
        act_ref[...] = x_ref[0].astype(jnp.float32)

    x = act_ref[...]                                  # (N, D) f32 residual stream
    n_tok, dim = x.shape

    vecs = vecs_ref[0]                                # (6, D) f32
    ln1_g, ln1_b, bo = vecs[0], vecs[1], vecs[2]
    ln2_g, ln2_b, b2 = vecs[3], vecs[4], vecs[5]

    def layernorm(v, g, b):
        # single-pass statistics: mean and E[v^2] -> var = E[v^2] - mean^2
        mu = jnp.mean(v, axis=-1, keepdims=True)
        ms = jnp.mean(v * v, axis=-1, keepdims=True)
        var = ms - mu * mu
        return (v - mu) * jax.lax.rsqrt(var + eps) * g + b

    # ------------------------- PreNorm + Attention ---------------------------
    xn = layernorm(x, ln1_g, ln1_b).astype(jnp.bfloat16)          # (N, D)
    xn_h = jnp.broadcast_to(xn, (3 * heads, n_tok, dim))          # (3H, N, D)

    # Single head-batched matmul producing q/k/v in head-major layout.
    qkv = jnp.einsum("hnd,hdk->hnk", xn_h, wqkv_ref[0],
                     preferred_element_type=jnp.float32).astype(jnp.bfloat16)
    q = qkv[:heads]                                   # (H, N, Dh) scale folded in
    k = qkv[heads:2 * heads]
    v = qkv[2 * heads:]

    # (H, N, N) scores in f32; scale already folded into the q weights.
    dots = jnp.einsum("hqd,hkd->hqk", q, k,
                      preferred_element_type=jnp.float32)
    dots = dots - jnp.max(dots, axis=-1, keepdims=True)
    p = jnp.exp(dots)
    p = p * pl.reciprocal(jnp.sum(p, axis=-1, keepdims=True), approx=True)
    p = p.astype(jnp.bfloat16)

    o_h = jnp.einsum("hqk,hkd->hqd", p, v,
                     preferred_element_type=jnp.float32).astype(jnp.bfloat16)
    # per-head projection then sum over heads == concat(heads) @ W_out
    proj = jnp.einsum("hnd,hdo->hno", o_h, wo_ref[0],
                      preferred_element_type=jnp.float32)         # (H, N, D) f32
    x = x + jnp.sum(proj, axis=0) + bo

    # ------------------------ PreNorm + FeedForward ---------------------------
    xn2 = layernorm(x, ln2_g, ln2_b).astype(jnp.bfloat16)
    h1 = jnp.dot(xn2, w1_ref[0],
                 preferred_element_type=jnp.float32) + b1_ref[0, 0]
    # exact GELU (PyTorch nn.GELU default), kept in f32
    h1 = 0.5 * h1 * (1.0 + jax.lax.erf(h1 * inv_sqrt2))
    h2 = jnp.dot(h1.astype(jnp.bfloat16), w2_ref[0],
                 preferred_element_type=jnp.float32) + b2
    x = x + h2

    act_ref[...] = x

    @pl.when(layer == n_layers - 1)
    def _():
        o_ref[0] = x.astype(o_ref.dtype)


# =============================================================================
# Wrapper: single pallas_call over grid (batch, depth).
# =============================================================================
def transformer_forward(x, packed, *, heads, dim_head):
    B, N, D = x.shape
    weight_order = ("vecs", "b1", "wqkv", "wo", "w1", "w2")
    weights = [packed[k] for k in weight_order]
    depth = packed["wqkv"].shape[0]
    mlp_dim = packed["w1"].shape[-1]

    def weight_spec(arr):
        nd = arr.ndim
        return pl.BlockSpec(
            (1,) + arr.shape[1:],
            lambda b, l, _nd=nd: (l,) + (0,) * (_nd - 1),
        )

    in_specs = [pl.BlockSpec((1, N, D), lambda b, l: (b, 0, 0))]
    in_specs += [weight_spec(w) for w in weights]
    out_spec = pl.BlockSpec((1, N, D), lambda b, l: (b, 0, 0))

    # VMEM budget: double-buffered per-layer weights + activation working set.
    per_layer_weight_bytes = sum(int(w.nbytes) // depth for w in weights)
    act_bytes = (
        heads * N * N * 4                  # attention scores
        + 7 * heads * N * dim_head * 4     # q, k, v (x3 heads batched), outputs
        + 2 * heads * N * D * 4            # broadcast xn + per-head projection
        + 2 * N * mlp_dim * 4              # MLP hidden (pre / post GELU)
        + 8 * N * D * 4                    # residual stream, LN temps, i/o blocks
    )
    vmem_limit = 2 * per_layer_weight_bytes + act_bytes + (8 << 20)
    vmem_limit = max(32 << 20, min(int(vmem_limit), 64 << 20))

    kernel = functools.partial(fused_transformer_kernel, heads=heads)

    return pl.pallas_call(
        kernel,
        out_shape=jax.ShapeDtypeStruct((B, N, D), x.dtype),
        grid=(B, depth),
        in_specs=in_specs,
        out_specs=out_spec,
        scratch_shapes=[pltpu.VMEM((N, D), jnp.float32)],
        compiler_params=pltpu.CompilerParams(
            dimension_semantics=("parallel", "arbitrary"),
            vmem_limit_bytes=vmem_limit,
        ),
    )(x, *weights)


# =============================================================================
# Parameter construction (PyTorch-layout f32) + packing into kernel layout.
# =============================================================================
def init_params(key, depth, dim, heads, dim_head, mlp_dim):
    inner = heads * dim_head
    layers = []
    for _ in range(depth):
        key, k0, k1, k2, k3 = jax.random.split(key, 5)
        layers.append({
            "ln1_g": jnp.ones((dim,), jnp.float32),
            "ln1_b": jnp.zeros((dim,), jnp.float32),
            # Linear weights pre-transposed to (in_features, out_features)
            "wqkv": 0.02 * jax.random.normal(k0, (dim, 3 * inner), jnp.float32),
            "wout": 0.02 * jax.random.normal(k1, (inner, dim), jnp.float32),
            "bout": jnp.zeros((dim,), jnp.float32),
            "ln2_g": jnp.ones((dim,), jnp.float32),
            "ln2_b": jnp.zeros((dim,), jnp.float32),
            "w1": 0.02 * jax.random.normal(k2, (dim, mlp_dim), jnp.float32),
            "b1": jnp.zeros((mlp_dim,), jnp.float32),
            "w2": 0.02 * jax.random.normal(k3, (mlp_dim, dim), jnp.float32),
            "b2": jnp.zeros((dim,), jnp.float32),
        })
    return layers


def pack_params(layers, *, heads, dim_head):
    dim = layers[0]["w1"].shape[0]
    inner = heads * dim_head
    scale = dim_head ** (-0.5)

    def head_major_in(w):      # (dim, inner) -> (heads, dim, dim_head)
        return w.reshape(dim, heads, dim_head).transpose(1, 0, 2)

    # (depth, 3*heads, dim, dim_head): rows [0:H] = q (scale folded), [H:2H] = k,
    # [2H:3H] = v.
    wqkv = jnp.stack([
        jnp.concatenate([
            head_major_in(p["wqkv"][:, 0 * inner:1 * inner]) * scale,
            head_major_in(p["wqkv"][:, 1 * inner:2 * inner]),
            head_major_in(p["wqkv"][:, 2 * inner:3 * inner]),
        ], axis=0)
        for p in layers
    ])

    wo = jnp.stack([p["wout"].reshape(heads, dim_head, dim) for p in layers])

    # (depth, 6, dim) f32: ln1_g, ln1_b, bout, ln2_g, ln2_b, b2
    vecs = jnp.stack([
        jnp.stack([p["ln1_g"], p["ln1_b"], p["bout"],
                   p["ln2_g"], p["ln2_b"], p["b2"]])
        for p in layers
    ])

    b1 = jnp.stack([p["b1"] for p in layers])[:, None, :]   # (depth, 1, mlp)

    return {
        "vecs": vecs,
        "b1": b1,
        "wqkv": wqkv.astype(jnp.bfloat16),
        "wo": wo.astype(jnp.bfloat16),
        "w1": jnp.stack([p["w1"] for p in layers]).astype(jnp.bfloat16),
        "w2": jnp.stack([p["w2"] for p in layers]).astype(jnp.bfloat16),
    }


# =============================================================================
# Pure-JAX f32 reference (mirrors the PyTorch forward exactly).
# =============================================================================
def _layernorm_ref(x, g, b, eps=1e-5):
    mu = jnp.mean(x, axis=-1, keepdims=True)
    var = jnp.mean((x - mu) ** 2, axis=-1, keepdims=True)
    return (x - mu) / jnp.sqrt(var + eps) * g + b


def transformer_ref(x, layers, *, heads, dim_head):
    scale = dim_head ** (-0.5)
    inner = heads * dim_head
    for p in layers:
        xn = _layernorm_ref(x, p["ln1_g"], p["ln1_b"])
        qkv = xn @ p["wqkv"]
        q, k, v = jnp.split(qkv, 3, axis=-1)

        def to_heads(t):
            B, N, _ = t.shape
            return t.reshape(B, N, heads, dim_head).transpose(0, 2, 1, 3)

        q, k, v = map(to_heads, (q, k, v))
        dots = jnp.einsum("bhnd,bhmd->bhnm", q, k) * scale
        attn = jax.nn.softmax(dots, axis=-1)
        out = jnp.einsum("bhnm,bhmd->bhnd", attn, v)
        B, _, N, _ = out.shape
        out = out.transpose(0, 2, 1, 3).reshape(B, N, inner)
        x = x + out @ p["wout"] + p["bout"]

        xn2 = _layernorm_ref(x, p["ln2_g"], p["ln2_b"])
        h = xn2 @ p["w1"] + p["b1"]
        h = 0.5 * h * (1.0 + jax.lax.erf(h * 0.7071067811865476))
        x = x + h @ p["w2"] + p["b2"]
    return x


if __name__ == "__main__":
    # Small deterministic config consistent with Transformer(dim, depth, heads,
    # dim_head, mlp_dim); input x is (batch, seq, dim).
    B, N = 2, 8
    dim, depth, heads, dim_head, mlp_dim = 32, 2, 4, 8, 64

    key = jax.random.PRNGKey(0)
    key, xkey = jax.random.split(key)
    x = jax.random.normal(xkey, (B, N, dim), jnp.float32)

    layers = init_params(key, depth, dim, heads, dim_head, mlp_dim)
    packed = pack_params(layers, heads=heads, dim_head=dim_head)

    out = transformer_forward(x, packed, heads=heads, dim_head=dim_head)
    out = jax.block_until_ready(out)

    ref = transformer_ref(x, layers, heads=heads, dim_head=dim_head)
    assert out.shape == (B, N, dim)
    # bf16 MXU operands (f32 accumulation) + approx softmax reciprocal -> widened tolerance
    max_err = float(jnp.max(jnp.abs(out - ref)))
    assert jnp.allclose(out, ref, atol=2e-2, rtol=2e-2), f"mismatch vs. reference (max abs err {max_err})"

    print("KERNEL_OK")
</pallas_src>

<mosaic_0001>
module attributes {stable_mosaic.version = 11 : i64} {
  func.func @fused_transformer_kernel(%arg0: i32, %arg1: i32, %arg2: memref<1x8x32xf32, #tpu.memory_space<vmem>>, %arg3: memref<1x6x32xf32, #tpu.memory_space<vmem>>, %arg4: memref<1x1x64xf32, #tpu.memory_space<vmem>>, %arg5: memref<1x12x32x8xbf16, #tpu.memory_space<vmem>>, %arg6: memref<1x4x8x32xbf16, #tpu.memory_space<vmem>>, %arg7: memref<1x32x64xbf16, #tpu.memory_space<vmem>>, %arg8: memref<1x64x32xbf16, #tpu.memory_space<vmem>>, %arg9: memref<1x8x32xf32, #tpu.memory_space<vmem>>, %arg10: memref<8x32xf32, #tpu.memory_space<vmem>>) attributes {dimension_semantics = [#tpu.dimension_semantics<parallel>, #tpu.dimension_semantics<arbitrary>], iteration_bounds = array<i64: 2, 2>, scalar_prefetch = 0 : i64, scratch_operands = 1 : i64, tpu.core_type = #tpu.core_type<tc>, window_params = [{transform_indices = @transform_0, window_bounds = array<i64: 1, 8, 32>}, {transform_indices = @transform_1, window_bounds = array<i64: 1, 6, 32>}, {transform_indices = @transform_2, window_bounds = array<i64: 1, 1, 64>}, {transform_indices = @transform_3, window_bounds = array<i64: 1, 12, 32, 8>}, {transform_indices = @transform_4, window_bounds = array<i64: 1, 4, 8, 32>}, {transform_indices = @transform_5, window_bounds = array<i64: 1, 32, 64>}, {transform_indices = @transform_6, window_bounds = array<i64: 1, 64, 32>}, {transform_indices = @transform_7, window_bounds = array<i64: 1, 8, 32>}]} {
    %c0_i32 = arith.constant 0 : i32
    %0 = arith.cmpi eq, %arg1, %c0_i32 : i32
    %1 = arith.extui %0 : i1 to i32
    %c0_i32_0 = arith.constant 0 : i32
    %2 = arith.cmpi ne, %1, %c0_i32_0 : i32
    scf.if %2 {
      %c0_46 = arith.constant 0 : index
      %c0_47 = arith.constant 0 : index
      %c0_48 = arith.constant 0 : index
      %127 = vector.load %arg2[%c0_46, %c0_47, %c0_48] : memref<1x8x32xf32, #tpu.memory_space<vmem>>, vector<1x8x32xf32>
      %128 = vector.shape_cast %127 : vector<1x8x32xf32> to vector<8x32xf32>
      %c0_49 = arith.constant 0 : index
      %c0_50 = arith.constant 0 : index
      %129 = vector.load %arg10[%c0_49, %c0_50] : memref<8x32xf32, #tpu.memory_space<vmem>>, vector<8x32xf32>
      tpu.vector_store %arg10[%c0_49, %c0_50], %128 {strides = array<i32>} : memref<8x32xf32, #tpu.memory_space<vmem>>, vector<8x32xf32>,
    } else {
    }
    %c0 = arith.constant 0 : index
    %c0_1 = arith.constant 0 : index
    %3 = vector.load %arg10[%c0, %c0_1] : memref<8x32xf32, #tpu.memory_space<vmem>>, vector<8x32xf32>
    %c0_2 = arith.constant 0 : index
    %c0_3 = arith.constant 0 : index
    %c0_4 = arith.constant 0 : index
    %4 = vector.load %arg3[%c0_2, %c0_3, %c0_4] : memref<1x6x32xf32, #tpu.memory_space<vmem>>, vector<1x6x32xf32>
    %5 = vector.shape_cast %4 : vector<1x6x32xf32> to vector<6x32xf32>
    %6 = vector.extract_strided_slice %5 {offsets = [0, 0], sizes = [1, 32], strides = [1, 1]} : vector<6x32xf32> to vector<1x32xf32>
    %7 = vector.shape_cast %6 : vector<1x32xf32> to vector<32xf32>
    %8 = vector.extract_strided_slice %5 {offsets = [1, 0], sizes = [1, 32], strides = [1, 1]} : vector<6x32xf32> to vector<1x32xf32>
    %9 = vector.shape_cast %8 : vector<1x32xf32> to vector<32xf32>
    %10 = vector.extract_strided_slice %5 {offsets = [2, 0], sizes = [1, 32], strides = [1, 1]} : vector<6x32xf32> to vector<1x32xf32>
    %11 = vector.shape_cast %10 : vector<1x32xf32> to vector<32xf32>
    %12 = vector.extract_strided_slice %5 {offsets = [3, 0], sizes = [1, 32], strides = [1, 1]} : vector<6x32xf32> to vector<1x32xf32>
    %13 = vector.shape_cast %12 : vector<1x32xf32> to vector<32xf32>
    %14 = vector.extract_strided_slice %5 {offsets = [4, 0], sizes = [1, 32], strides = [1, 1]} : vector<6x32xf32> to vector<1x32xf32>
    %15 = vector.shape_cast %14 : vector<1x32xf32> to vector<32xf32>
    %16 = vector.extract_strided_slice %5 {offsets = [5, 0], sizes = [1, 32], strides = [1, 1]} : vector<6x32xf32> to vector<1x32xf32>
    %17 = vector.shape_cast %16 : vector<1x32xf32> to vector<32xf32>
    %cst = arith.constant dense<0.000000e+00> : vector<8xf32>
    %18 = vector.multi_reduction <add>, %3, %cst [1] : vector<8x32xf32> to vector<8xf32>
    %19 = vector.shape_cast %18 : vector<8xf32> to vector<8x1xf32>
    %cst_5 = arith.constant 3.200000e+01 : f32
    %20 = vector.broadcast %cst_5 : f32 to vector<8x1xf32>
    %21 = arith.divf %19, %20 : vector<8x1xf32>
    %22 = arith.mulf %3, %3 : vector<8x32xf32>
    %cst_6 = arith.constant dense<0.000000e+00> : vector<8xf32>
    %23 = vector.multi_reduction <add>, %22, %cst_6 [1] : vector<8x32xf32> to vector<8xf32>
    %24 = vector.shape_cast %23 : vector<8xf32> to vector<8x1xf32>
    %cst_7 = arith.constant 3.200000e+01 : f32
    %25 = vector.broadcast %cst_7 : f32 to vector<8x1xf32>
    %26 = arith.divf %24, %25 : vector<8x1xf32>
    %27 = arith.mulf %21, %21 : vector<8x1xf32>
    %28 = arith.subf %26, %27 : vector<8x1xf32>
    %29 = vector.broadcast %21 : vector<8x1xf32> to vector<8x32xf32>
    %30 = arith.subf %3, %29 : vector<8x32xf32>
    %cst_8 = arith.constant 9.99999974E-6 : f32
    %31 = vector.broadcast %cst_8 : f32 to vector<8x1xf32>
    %32 = arith.addf %28, %31 : vector<8x1xf32>
    %33 = math.rsqrt %32 : vector<8x1xf32>
    %34 = vector.broadcast %33 : vector<8x1xf32> to vector<8x32xf32>
    %35 = arith.mulf %30, %34 : vector<8x32xf32>
    %36 = vector.shape_cast %7 : vector<32xf32> to vector<1x32xf32>
    %37 = vector.broadcast %36 : vector<1x32xf32> to vector<8x32xf32>
    %38 = arith.mulf %35, %37 : vector<8x32xf32>
    %39 = vector.shape_cast %9 : vector<32xf32> to vector<1x32xf32>
    %40 = vector.broadcast %39 : vector<1x32xf32> to vector<8x32xf32>
    %41 = arith.addf %38, %40 : vector<8x32xf32>
    %42 = arith.truncf %41 : vector<8x32xf32> to vector<8x32xbf16>
    %43 = vector.shape_cast %42 : vector<8x32xbf16> to vector<1x8x32xbf16>
    %44 = vector.broadcast %43 : vector<1x8x32xbf16> to vector<12x8x32xbf16>
    %c0_9 = arith.constant 0 : index
    %c0_10 = arith.constant 0 : index
    %c0_11 = arith.constant 0 : index
    %c0_12 = arith.constant 0 : index
    %45 = vector.load %arg5[%c0_9, %c0_10, %c0_11, %c0_12] : memref<1x12x32x8xbf16, #tpu.memory_space<vmem>>, vector<1x12x32x8xbf16>
    %46 = vector.shape_cast %45 : vector<1x12x32x8xbf16> to vector<12x32x8xbf16>
    "tpu.trace_start"() <{level = 10 : i32, message = "hnd,hdk->hnk"}> : () -> ()
    %cst_13 = arith.constant dense<0.000000e+00> : vector<12x8x8xf32>
    %47 = tpu.matmul %44, %46, %cst_13 {dimension_numbers = #tpu.dot_dimension_numbers<[2], [1], [1], [2], [0, 0, 0, 1, 1, 2], [0], [0]>} : vector<12x8x32xbf16>, vector<12x32x8xbf16>, vector<12x8x8xf32> -> vector<12x8x8xf32>
    "tpu.trace_stop"() : () -> ()
    %48 = arith.truncf %47 : vector<12x8x8xf32> to vector<12x8x8xbf16>
    %49 = vector.extract_strided_slice %48 {offsets = [0, 0, 0], sizes = [4, 8, 8], strides = [1, 1, 1]} : vector<12x8x8xbf16> to vector<4x8x8xbf16>
    %50 = vector.extract_strided_slice %48 {offsets = [4, 0, 0], sizes = [4, 8, 8], strides = [1, 1, 1]} : vector<12x8x8xbf16> to vector<4x8x8xbf16>
    %51 = vector.extract_strided_slice %48 {offsets = [8, 0, 0], sizes = [4, 8, 8], strides = [1, 1, 1]} : vector<12x8x8xbf16> to vector<4x8x8xbf16>
    "tpu.trace_start"() <{level = 10 : i32, message = "hqd,hkd->hqk"}> : () -> ()
    %cst_14 = arith.constant dense<0.000000e+00> : vector<4x8x8xf32>
    %52 = tpu.matmul %49, %50, %cst_14 {dimension_numbers = #tpu.dot_dimension_numbers<[2], [2], [1], [1], [0, 0, 0, 1, 1, 1], [0], [0]>} : vector<4x8x8xbf16>, vector<4x8x8xbf16>, vector<4x8x8xf32> -> vector<4x8x8xf32>
    "tpu.trace_stop"() : () -> ()
    %cst_15 = arith.constant dense<0xFF800000> : vector<4x8xf32>
    %53 = vector.multi_reduction <maximumf>, %52, %cst_15 [2] : vector<4x8x8xf32> to vector<4x8xf32>
    %54 = vector.shape_cast %53 : vector<4x8xf32> to vector<4x8x1xf32>
    %55 = vector.broadcast %54 : vector<4x8x1xf32> to vector<4x8x8xf32>
    %56 = arith.subf %52, %55 : vector<4x8x8xf32>
    %57 = math.exp %56 : vector<4x8x8xf32>
    %cst_16 = arith.constant dense<0.000000e+00> : vector<4x8xf32>
    %58 = vector.multi_reduction <add>, %57, %cst_16 [2] : vector<4x8x8xf32> to vector<4x8xf32>
    %59 = vector.shape_cast %58 : vector<4x8xf32> to vector<4x8x1xf32>
    %60 = tpu.reciprocal %59 {approx = true} : vector<4x8x1xf32> -> vector<4x8x1xf32>
    %61 = vector.broadcast %60 : vector<4x8x1xf32> to vector<4x8x8xf32>
    %62 = arith.mulf %57, %61 : vector<4x8x8xf32>
    %63 = arith.truncf %62 : vector<4x8x8xf32> to vector<4x8x8xbf16>
    "tpu.trace_start"() <{level = 10 : i32, message = "hqk,hkd->hqd"}> : () -> ()
    %cst_17 = arith.constant dense<0.000000e+00> : vector<4x8x8xf32>
    %64 = tpu.matmul %63, %51, %cst_17 {dimension_numbers = #tpu.dot_dimension_numbers<[2], [1], [1], [2], [0, 0, 0, 1, 1, 2], [0], [0]>} : vector<4x8x8xbf16>, vector<4x8x8xbf16>, vector<4x8x8xf32> -> vector<4x8x8xf32>
    "tpu.trace_stop"() : () -> ()
    %65 = arith.truncf %64 : vector<4x8x8xf32> to vector<4x8x8xbf16>
    %c0_18 = arith.constant 0 : index
    %c0_19 = arith.constant 0 : index
    %c0_20 = arith.constant 0 : index
    %c0_21 = arith.constant 0 : index
    %66 = vector.load %arg6[%c0_18, %c0_19, %c0_20, %c0_21] : memref<1x4x8x32xbf16, #tpu.memory_space<vmem>>, vector<1x4x8x32xbf16>
    %67 = vector.shape_cast %66 : vector<1x4x8x32xbf16> to vector<4x8x32xbf16>
    "tpu.trace_start"() <{level = 10 : i32, message = "hnd,hdo->hno"}> : () -> ()
    %cst_22 = arith.constant dense<0.000000e+00> : vector<4x8x32xf32>
    %68 = tpu.matmul %65, %67, %cst_22 {dimension_numbers = #tpu.dot_dimension_numbers<[2], [1], [1], [2], [0, 0, 0, 1, 1, 2], [0], [0]>} : vector<4x8x8xbf16>, vector<4x8x32xbf16>, vector<4x8x32xf32> -> vector<4x8x32xf32>
    "tpu.trace_stop"() : () -> ()
    %cst_23 = arith.constant dense<0.000000e+00> : vector<8x32xf32>
    %69 = vector.multi_reduction <add>, %68, %cst_23 [0] : vector<4x8x32xf32> to vector<8x32xf32>
    %70 = arith.addf %3, %69 : vector<8x32xf32>
    %71 = vector.shape_cast %11 : vector<32xf32> to vector<1x32xf32>
    %72 = vector.broadcast %71 : vector<1x32xf32> to vector<8x32xf32>
    %73 = arith.addf %70, %72 : vector<8x32xf32>
    %cst_24 = arith.constant dense<0.000000e+00> : vector<8xf32>
    %74 = vector.multi_reduction <add>, %73, %cst_24 [1] : vector<8x32xf32> to vector<8xf32>
    %75 = vector.shape_cast %74 : vector<8xf32> to vector<8x1xf32>
    %cst_25 = arith.constant 3.200000e+01 : f32
    %76 = vector.broadcast %cst_25 : f32 to vector<8x1xf32>
    %77 = arith.divf %75, %76 : vector<8x1xf32>
    %78 = arith.mulf %73, %73 : vector<8x32xf32>
    %cst_26 = arith.constant dense<0.000000e+00> : vector<8xf32>
    %79 = vector.multi_reduction <add>, %78, %cst_26 [1] : vector<8x32xf32> to vector<8xf32>
    %80 = vector.shape_cast %79 : vector<8xf32> to vector<8x1xf32>
    %cst_27 = arith.constant 3.200000e+01 : f32
    %81 = vector.broadcast %cst_27 : f32 to vector<8x1xf32>
    %82 = arith.divf %80, %81 : vector<8x1xf32>
    %83 = arith.mulf %77, %77 : vector<8x1xf32>
    %84 = arith.subf %82, %83 : vector<8x1xf32>
    %85 = vector.broadcast %77 : vector<8x1xf32> to vector<8x32xf32>
    %86 = arith.subf %73, %85 : vector<8x32xf32>
    %cst_28 = arith.constant 9.99999974E-6 : f32
    %87 = vector.broadcast %cst_28 : f32 to vector<8x1xf32>
    %88 = arith.addf %84, %87 : vector<8x1xf32>
    %89 = math.rsqrt %88 : vector<8x1xf32>
    %90 = vector.broadcast %89 : vector<8x1xf32> to vector<8x32xf32>
    %91 = arith.mulf %86, %90 : vector<8x32xf32>
    %92 = vector.shape_cast %13 : vector<32xf32> to vector<1x32xf32>
    %93 = vector.broadcast %92 : vector<1x32xf32> to vector<8x32xf32>
    %94 = arith.mulf %91, %93 : vector<8x32xf32>
    %95 = vector.shape_cast %15 : vector<32xf32> to vector<1x32xf32>
    %96 = vector.broadcast %95 : vector<1x32xf32> to vector<8x32xf32>
    %97 = arith.addf %94, %96 : vector<8x32xf32>
    %98 = arith.truncf %97 : vector<8x32xf32> to vector<8x32xbf16>
    %c0_29 = arith.constant 0 : index
    %c0_30 = arith.constant 0 : index
    %c0_31 = arith.constant 0 : index
    %99 = vector.load %arg7[%c0_29, %c0_30, %c0_31] : memref<1x32x64xbf16, #tpu.memory_space<vmem>>, vector<1x32x64xbf16>
    %100 = vector.shape_cast %99 : vector<1x32x64xbf16> to vector<32x64xbf16>
    %cst_32 = arith.constant dense<0.000000e+00> : vector<8x64xf32>
    %101 = tpu.matmul %98, %100, %cst_32 {dimension_numbers = #tpu.dot_dimension_numbers<[1], [0], [0], [1], [0, 0, 1, 1], [], []>} : vector<8x32xbf16>, vector<32x64xbf16>, vector<8x64xf32> -> vector<8x64xf32>
    %c0_33 = arith.constant 0 : index
    %c0_34 = arith.constant 0 : index
    %c0_35 = arith.constant 0 : index
    %102 = vector.load %arg4[%c0_33, %c0_34, %c0_35] : memref<1x1x64xf32, #tpu.memory_space<vmem>>, vector<1x1x64xf32>
    %103 = vector.shape_cast %102 : vector<1x1x64xf32> to vector<64xf32>
    %104 = vector.shape_cast %103 : vector<64xf32> to vector<1x64xf32>
    %105 = vector.broadcast %104 : vector<1x64xf32> to vector<8x64xf32>
    %106 = arith.addf %101, %105 : vector<8x64xf32>
    %cst_36 = arith.constant 5.000000e-01 : f32
    %107 = vector.broadcast %cst_36 : f32 to vector<8x64xf32>
    %108 = arith.mulf %107, %106 : vector<8x64xf32>
    %cst_37 = arith.constant 0.707106769 : f32
    %109 = vector.broadcast %cst_37 : f32 to vector<8x64xf32>
    %110 = arith.mulf %106, %109 : vector<8x64xf32>
    %111 = math.erf %110 : vector<8x64xf32>
    %cst_38 = arith.constant 1.000000e+00 : f32
    %112 = vector.broadcast %cst_38 : f32 to vector<8x64xf32>
    %113 = arith.addf %112, %111 : vector<8x64xf32>
    %114 = arith.mulf %108, %113 : vector<8x64xf32>
    %115 = arith.truncf %114 : vector<8x64xf32> to vector<8x64xbf16>
    %c0_39 = arith.constant 0 : index
    %c0_40 = arith.constant 0 : index
    %c0_41 = arith.constant 0 : index
    %116 = vector.load %arg8[%c0_39, %c0_40, %c0_41] : memref<1x64x32xbf16, #tpu.memory_space<vmem>>, vector<1x64x32xbf16>
    %117 = vector.shape_cast %116 : vector<1x64x32xbf16> to vector<64x32xbf16>
    %cst_42 = arith.constant dense<0.000000e+00> : vector<8x32xf32>
    %118 = tpu.matmul %115, %117, %cst_42 {dimension_numbers = #tpu.dot_dimension_numbers<[1], [0], [0], [1], [0, 0, 1, 1], [], []>} : vector<8x64xbf16>, vector<64x32xbf16>, vector<8x32xf32> -> vector<8x32xf32>
    %119 = vector.shape_cast %17 : vector<32xf32> to vector<1x32xf32>
    %120 = vector.broadcast %119 : vector<1x32xf32> to vector<8x32xf32>
    %121 = arith.addf %118, %120 : vector<8x32xf32>
    %122 = arith.addf %73, %121 : vector<8x32xf32>
    %c0_43 = arith.constant 0 : index
    %c0_44 = arith.constant 0 : index
    %123 = vector.load %arg10[%c0_43, %c0_44] : memref<8x32xf32, #tpu.memory_space<vmem>>, vector<8x32xf32>
    tpu.vector_store %arg10[%c0_43, %c0_44], %122 {strides = array<i32>} : memref<8x32xf32, #tpu.memory_space<vmem>>, vector<8x32xf32>,
    %c1_i32 = arith.constant 1 : i32
    %124 = arith.cmpi eq, %arg1, %c1_i32 : i32
    %125 = arith.extui %124 : i1 to i32
    %c0_i32_45 = arith.constant 0 : i32
    %126 = arith.cmpi ne, %125, %c0_i32_45 : i32
    scf.if %126 {
      %c0_46 = arith.constant 0 : index
      %c0_47 = arith.constant 0 : index
      %c0_48 = arith.constant 0 : index
      %127 = vector.load %arg9[%c0_46, %c0_47, %c0_48] : memref<1x8x32xf32, #tpu.memory_space<vmem>>, vector<1x8x32xf32>
      %128 = vector.shape_cast %127 : vector<1x8x32xf32> to vector<8x32xf32>
      %129 = vector.shape_cast %122 : vector<8x32xf32> to vector<1x8x32xf32>
      tpu.vector_store %arg9[%c0_46, %c0_47, %c0_48], %129 {strides = array<i32>} : memref<1x8x32xf32, #tpu.memory_space<vmem>>, vector<1x8x32xf32>,
    } else {
    }
    return
  }
  func.func @transform_0(%arg0: i32, %arg1: i32) -> (i32, i32, i32) {
    %c0_i32 = arith.constant 0 : i32
    %c0_i32_0 = arith.constant 0 : i32
    %c0_i32_1 = arith.constant 0 : i32
    return %arg0, %c0_i32, %c0_i32_0 : i32, i32, i32
  }
  func.func @transform_1(%arg0: i32, %arg1: i32) -> (i32, i32, i32) {
    %c0_i32 = arith.constant 0 : i32
    %c0_i32_0 = arith.constant 0 : i32
    %c0_i32_1 = arith.constant 0 : i32
    return %arg1, %c0_i32, %c0_i32_0 : i32, i32, i32
  }
  func.func @transform_2(%arg0: i32, %arg1: i32) -> (i32, i32, i32) {
    %c0_i32 = arith.constant 0 : i32
    %c0_i32_0 = arith.constant 0 : i32
    %c0_i32_1 = arith.constant 0 : i32
    return %arg1, %c0_i32, %c0_i32_0 : i32, i32, i32
  }
  func.func @transform_3(%arg0: i32, %arg1: i32) -> (i32, i32, i32, i32) {
    %c0_i32 = arith.constant 0 : i32
    %c0_i32_0 = arith.constant 0 : i32
    %c0_i32_1 = arith.constant 0 : i32
    %c0_i32_2 = arith.constant 0 : i32
    return %arg1, %c0_i32, %c0_i32_0, %c0_i32_1 : i32, i32, i32, i32
  }
  func.func @transform_4(%arg0: i32, %arg1: i32) -> (i32, i32, i32, i32) {
    %c0_i32 = arith.constant 0 : i32
    %c0_i32_0 = arith.constant 0 : i32
    %c0_i32_1 = arith.constant 0 : i32
    %c0_i32_2 = arith.constant 0 : i32
    return %arg1, %c0_i32, %c0_i32_0, %c0_i32_1 : i32, i32, i32, i32
  }
  func.func @transform_5(%arg0: i32, %arg1: i32) -> (i32, i32, i32) {
    %c0_i32 = arith.constant 0 : i32
    %c0_i32_0 = arith.constant 0 : i32
    %c0_i32_1 = arith.constant 0 : i32
    return %arg1, %c0_i32, %c0_i32_0 : i32, i32, i32
  }
  func.func @transform_6(%arg0: i32, %arg1: i32) -> (i32, i32, i32) {
    %c0_i32 = arith.constant 0 : i32
    %c0_i32_0 = arith.constant 0 : i32
    %c0_i32_1 = arith.constant 0 : i32
    return %arg1, %c0_i32, %c0_i32_0 : i32, i32, i32
  }
  func.func @transform_7(%arg0: i32, %arg1: i32) -> (i32, i32, i32) {
    %c0_i32 = arith.constant 0 : i32
    %c0_i32_0 = arith.constant 0 : i32
    %c0_i32_1 = arith.constant 0 : i32
    return %arg0, %c0_i32, %c0_i32_0 : i32, i32, i32
  }
}

</mosaic_0001>

<bundles_post_ra>
// kernel: tpu_custom_call.1
= control target key start
LH: loop header
LB: loop body
LE: loop exit
PB: predicated region body
PF: predicated region fallthrough
CT: control target
= control target key end

     0   :  { %s2151_s0 = inlined_call_operand.vmem [shape: f32[2,8,32], index: 0, kind: input, shape index: {}]   ;;  %s2152_s1 = inlined_call_operand.vmem [shape: f32[2,6,32], index: 1, kind: input, shape index: {}]   ;;  %s2153_s2 = inlined_call_operand.vmem [shape: f32[2,1,64], index: 2, kind: input, shape index: {}]   ;;  %s2154_s3 = inlined_call_operand.vmem [shape: bf16[2,12,32,8], index: 3, kind: input, shape index: {}]   ;;  %s2155_s4 = inlined_call_operand.vmem [shape: bf16[2,4,8,32], index: 4, kind: input, shape index: {}]   ;;  %s2156_s5 = inlined_call_operand.vmem [shape: bf16[2,32,64], index: 5, kind: input, shape index: {}]   ;;  %s2157_s6 = inlined_call_operand.vmem [shape: bf16[2,64,32], index: 6, kind: input, shape index: {}]   ;;  %s2158_s7 = inlined_call_operand.hbm [shape: f32[2,8,32], index: 7, kind: output, shape index: {}]  }
   0x1   :  { %2168 = sst [smem:[#allocation15_spill]] %s2151_s0 }
   0x2   :  { %12 = vsyncpa [#allocation4], 0 }
   0x3   :  { %14 = vsyncpa [#allocation4 + $0x1], 0  ;;  %s1861_s24 = smov 0   ;;  %s1863_s25 = smov 0  }
   0x4   :  { %s1865_s26 = smov 0   ;;  %s1867_s27 = smov 0  }
   0x5   :  { %s1869_s28 = smov 0   ;;  %s1871_s29 = smov 0  }
   0x6   :  { %s1873_s30 = smov 0   ;;  %s1875_s8 = smov 0  }
   0x7 LB: > { %2169 = sst [smem:[#allocation6_spill]] %s1790_s24  ;;  %s1425_s9 = sadd.s32 4294967295, %s1818_s8   ;;  %s1818_s8 = sphi %s1875_s8, %s20_s8   ;;  %s1814_s30 = sphi %s1873_s30, %s2191_s30   ;;  %s1810_s29 = sphi %s1871_s29, %s2195_s29   ;;  %s1806_s28 = sphi %s1869_s28, %s2189_s28   ;;  %s1802_s27 = sphi %s1867_s27, %s2188_s27   ;;  %s1798_s26 = sphi %s1865_s26, %s2194_s26   ;;  %s1794_s25 = sphi %s1863_s25, %s2193_s25   ;;  %s1790_s24 = sphi %s1861_s24, %s2192_s24  }
   0x8   : > { %2170 = sst [smem:[#allocation7_spill]] %s1798_s26  ;;  %s1426_s10 = sadd.s32 4294967294, %s1818_s8  }
   0x9   : > { %2171 = sst [smem:[#allocation8_spill]] %s1810_s29  ;;  %s29_s11 = sadd.s32 1, %s1810_s29 }
   0xa   : > { %2172 = sst [smem:[#allocation9_spill]] %s1814_s30  ;;  %p30_p0 = scmp.ge.s32.totalorder %s29_s11, 2 }
   0xb   : > { %2173 = sst [smem:[#allocation10_spill]] %s1818_s8  ;;  %s32_s12 = sadd.s32 1, %s1814_s30 }
   0xc   : > { %p231_p1 = scmp.ne.s32.totalorder %s1798_s26, %s1794_s25  ;;  %p232_p2 = scmp.eq.s32.totalorder %s1425_s9, 3 }
   0xd   : > { %s2197_s11 = smov (%p30_p0, %s29_s11), 0  ;;  %s2199_s12 = smov (!%p30_p0, %s32_s12), %s1814_s30 }
   0xe   : > { %2174 = sst [smem:[#allocation11_spill]] %s2197_s11  ;;  %p1910_p3 = por %p232_p2, %p231_p1 }
   0xf   : > { %p237_p4 = scmp.ne.s32.totalorder %s1794_s25, %s1790_s24  ;;  %p34_p5 = scmp.ge.s32.totalorder %s2199_s12, 2 }
  0x10   : > { %p238_p6 = scmp.eq.s32.totalorder %s1426_s10, 3  ;;  %p1429_p7 = scmp.ge.s32.totalorder %s1818_s8, 1 }
  0x11   : > { %p308_p8 = scmp.lt.s32.totalorder %s1818_s8, 5  ;;  %s2201_s12 = smov (%p34_p5, %s2199_s12), 0 }
  0x12   : > { %2176 = sst [smem:[#allocation12_spill]] %s2201_s12  ;;  %p1920_p9 = por %p238_p6, %p237_p4 }
  0x13   : > { %p309_p10 = pnand %p1429_p7, %p308_p8  ;;  %s218_s15 = ssub.s32 %s1814_s30, %s2201_s12 }
  0x14   : > { %s2177_s14 = scalar_select %p1920_p9, 1, 0 }
  0x15   : > { %s221_s16 = sadd.s32 1, %s1798_s26  ;;  %p219_p11 = scmp.eq.s32.totalorder %s218_s15, 0 }
  0x16   : > { %2178 = sst [smem:[#allocation13_spill]] %s2177_s14  ;;  %312 = sbr.rel (%p309_p10) target bundleno = 1516 (0x5ec), region = 48 }
  0x17   : > { %s1928_s17 = scalar_select %p219_p11, %s1798_s26, %s221_s16  }
  0x18   : > { %s2160_s18 = sand.u32 (!%p309_p10), 1, %s1794_s25   ;;  %p366_p12 = scmp.lt.s32.totalorder (!%p309_p10), %s1806_s28, 1 }
  0x19   : > { %2179 = sst [smem:[#allocation14_spill]] %s1928_s17  ;;  %s1934_s19 = sshll.u32 (!%p309_p10), %s2160_s18, 3 }
  0x1a   : > { %p370_p13 = scmp.lt.s32.totalorder (!%p309_p10), %s1802_s27, 1  ;;  %s2180_s0 = sld [smem:[#allocation15_spill]] (!%p309_p10) }
  0x1b   : > { %s367_s20 = scalar_select %p366_p12, %s1806_s28, 1 }
  0x1c   : > { %s1939_s21 = scalar_select %p370_p13, %s1802_s27, 1 }
  0x1d   : > { %s1431_s22 = sshll.u32 %s367_s20, 3  ;;  %p1440_p0 = scmp.ne.s32.totalorder %s1802_s27, 0 }
  0x1e   : > { %s1432_s15 = sshll.u32 %s1939_s21, 3  ;;  %s1626_s17 = smul.u32 192, %s1939_s21 }
  0x1f   : > { %s1948_s18 = scalar_lea.vmem %s2152_s1, %s1432_s15  ;;  %s1593_s26 = sshll.u32 %s1939_s21, 4 }
  0x20   : > { %s369_s10 = scalar_lea.vmem %s2180_s0, %s1431_s22  ;;  %s1959_s20 = scalar_lea.vmem %s2155_s4, %s1593_s26 }
  0x21   : > { %s1964_s22 = scalar_lea.vmem %s2156_s5, %s1593_s26  ;;  %s1969_s15 = scalar_lea.vmem %s2154_s3, %s1626_s17 }
  0x22   : > { %s1595_s16 = sshll.u32 %s1939_s21, 5  ;;  %s365_s0 = scalar_lea.vmem [#allocation3], %s1934_s19 }
  0x23   : > { %s1975_s29 = scalar_lea.vmem %s2157_s6, %s1595_s16  ;;  %401 = sbr.rel (%p1440_p0) target bundleno = 42 (0x2a), region = 52 }
  0x28   : > { %v402_v0 = vld [vmem:[%s369_s10] sm:$0xff]  ;;  %vm403_vm0 = vcmask 261120  }
  0x29   : > { %404 = vst.msk [vmem:[#allocation2] sm:$0xff] %vm403_vm0, %v402_v0 }
  0x2a PF: > { %vm407_vm1 = vcmask 261120   ;;  %v1820_v5 = vmov 32.0   ;;  %v1597_v12 = vld [vmem:[%s1969_s15 + $0x8] sm:$0xff]  ;;  %v1599_v13 = vld [vmem:[%s1969_s15 + $0x18] sm:$0xff]  ;;  %v1596_v17 = vld [vmem:[%s1969_s15] sm:$0xff]  ;;  %vm807_vm6 = vcmask 64512   ;;  %s2181_s8 = scalar_lea.vmem %s2153_s2, %s1939_s21 }
  0x2b   : > { %1700 = vrcp.f32 %v1820_v5  ;;  %v1601_v14 = vld [vmem:[%s1969_s15 + $0x28] sm:$0xff]  ;;  %v1603_v15 = vld [vmem:[%s1969_s15 + $0x38] sm:$0xff]  ;;  %513 = vmatpush.bf16.msra.mxu0 %v1597_v12  ;;  %538 = vmatpush.bf16.msra.mxu1 %v1599_v13  ;;  %v1598_v18 = vld [vmem:[%s1969_s15 + $0x10] sm:$0xff]  ;;  %vm935_vm7 = vcmask 1043456   ;;  %vm1246_vm15 = vcmask 523264   ;;  %p1588_p1 = scmp.ne.s32.totalorder %s1802_s27, 1 }
  0x2c   : > { %563 = vmatpush.bf16.msra.mxu2 %v1601_v14  ;;  %588 = vmatpush.bf16.msra.mxu3 %v1603_v15  ;;  %v1600_v19 = vld [vmem:[%s1969_s15 + $0x20] sm:$0xff]  ;;  %v1602_v21 = vld [vmem:[%s1969_s15 + $0x30] sm:$0xff]  ;;  %v1605_v25 = vld [vmem:[%s1969_s15 + $0x48] sm:$0xff] }
  0x2d   : > { %v1607_v26 = vld [vmem:[%s1969_s15 + $0x58] sm:$0xff]  ;;  %v1609_v27 = vld [vmem:[%s1969_s15 + $0x68] sm:$0xff]  ;;  %v1604_v30 = vld [vmem:[%s1969_s15 + $0x40] sm:$0xff] }
  0x2e   : > { %v1611_v29 = vld [vmem:[%s1969_s15 + $0x78] sm:$0xff]  ;;  %v1606_v31 = vld [vmem:[%s1969_s15 + $0x50] sm:$0xff]  ;;  %v1608_v33 = vld [vmem:[%s1969_s15 + $0x60] sm:$0xff] }
  0x2f   : > { %514 = vmatpush.bf16.msra.mxu0 %v1596_v17  ;;  %539 = vmatpush.bf16.msra.mxu1 %v1598_v18  ;;  %v1610_v34 = vld [vmem:[%s1969_s15 + $0x70] sm:$0xff]  ;;  %v2007_v39 = vld [vmem:[%s1948_s18] sm:$0x3f]  ;;  %v1613_v50 = vld [vmem:[%s1969_s15 + $0x88] sm:$0xff] }
  0x30   : > { %v1979_v1 = vld [vmem:[#allocation2] sm:$0xff]  ;;  %564 = vmatpush.bf16.msra.mxu2 %v1600_v19  ;;  %589 = vmatpush.bf16.msra.mxu3 %v1602_v21  ;;  %v439_v43 = vperm.slane %v2007_v39, 0  ;;  %v441_v45 = vperm.slane %v2007_v39, 1  ;;  %v1615_v51 = vld [vmem:[%s1969_s15 + $0x98] sm:$0xff]  ;;  %v1617_v52 = vld [vmem:[%s1969_s15 + $0xa8] sm:$0xff] }
  0x31   : > { %v408_v2 = vsel %vm407_vm1, %v1979_v1, 0.0  ;;  %v419_v3 = vmul.f32 %v1979_v1, %v1979_v1  ;;  %v1701_v6 = vpop.eup %1700  ;;  %v1619_v53 = vld [vmem:[%s1969_s15 + $0xb8] sm:$0xff]  ;;  %v1612_v54 = vld [vmem:[%s1969_s15 + $0x80] sm:$0xff]  ;;  %v1614_v55 = vld [vmem:[%s1969_s15 + $0x90] sm:$0xff] }
  0x32   : > { %409 = vadd.xlane.f32.xlu0 %v408_v2  ;;  %v412_v7 = vmul.f32 32.0, %v1701_v6  ;;  %vm416_vm2 = vweird.f32 %v1701_v6  ;;  %v1616_v56 = vld [vmem:[%s1969_s15 + $0xa0] sm:$0xff]  ;;  %v1618_v57 = vld [vmem:[%s1969_s15 + $0xb0] sm:$0xff] }
  0x33   : > { %v420_v4 = vsel %vm407_vm1, %v419_v3, 0.0  ;;  %613 = vmatpush.bf16.msrb.mxu0 %v1605_v25  ;;  %638 = vmatpush.bf16.msrb.mxu1 %v1607_v26 }
  0x34   : > { %v413_v8 = vsub.f32 1.0, %v412_v7  ;;  %663 = vmatpush.bf16.msrb.mxu2 %v1609_v27  ;;  %688 = vmatpush.bf16.msrb.mxu3 %v1611_v29 }
  0x36   : > { %v414_v9 = vmul.f32 %v1701_v6, %v413_v8 }
  0x37   : > { %614 = vmatpush.bf16.msrb.mxu0 %v1604_v30  ;;  %639 = vmatpush.bf16.msrb.mxu1 %v1606_v31 }
  0x38   : > { %v415_v10 = vadd.f32 %v1701_v6, %v414_v9  ;;  %664 = vmatpush.bf16.msrb.mxu2 %v1608_v33  ;;  %689 = vmatpush.bf16.msrb.mxu3 %v1610_v34 }
  0x3a   : > { %421 = vadd.xlane.f32.xlu0 %v420_v4  ;;  %v1990_v16 = vsel %vm416_vm2, %v1701_v6, %v415_v10 }
  0xa5   : > { %v410_v11 = vpop.xlane.xlu0 %409 }
  0xa6   : > { %v418_v20 = vmul.f32 %v1990_v16, %v410_v11 }
  0xa8   : > { %v424_v23 = vmul.f32 %v418_v20, %v418_v20  ;;  %v426_v42 = vsub.f32 %v1979_v1, %v418_v20 }
  0xad   : > { %v422_v22 = vpop.xlane.xlu0 %421 }
  0xae   : > { %v423_v24 = vmul.f32 %v422_v22, %v1990_v16 }
  0xb0   : > { %v425_v28 = vsub.f32 %v423_v24, %v424_v23 }
  0xb2   : > { %v427_v32 = vadd.f32 1e-05, %v425_v28 }
  0xb4   : > { %1702 = vrsqrt.f32 %v427_v32  ;;  %vm434_vm4 = vweird.f32 %v427_v32 }
  0xba   : > { %v1703_v35 = vpop.eup %1702 }
  0xbb   : > { %v429_v36 = vmul.f32 %v1703_v35, %v427_v32  ;;  %vm435_vm3 = vweird.f32 %v1703_v35 }
  0xbc   : > { %vm436_vm5 = vmor %vm434_vm4, %vm435_vm3 }
  0xbd   : > { %v430_v37 = vmul.f32 %v1703_v35, %v429_v36 }
  0xbf   : > { %v431_v38 = vmul.f32 0.5, %v430_v37 }
  0xc1   : > { %v432_v40 = vsub.f32 1.5, %v431_v38 }
  0xc3   : > { %v433_v41 = vmul.f32 %v1703_v35, %v432_v40 }
  0xc5   : > { %v437_v44 = vsel %vm436_vm5, %v1703_v35, %v433_v41 }
  0xc6   : > { %v438_v46 = vmul.f32 %v437_v44, %v426_v42 }
  0xc8   : > { %v440_v47 = vmul.f32 %v439_v43, %v438_v46 }
  0xca   : > { %v442_v48 = vadd.f32 %v441_v45, %v440_v47 }
  0xcc   : > { %v443_v49 = vpack.c.bf16 %v442_v48, %v442_v48 }
  0xce   : > { %1449 = vmatmul.msk.bf16.vlgmr.msra.gmra.mxu0 %vm407_vm1, %v443_v49  ;;  %1458 = vmatmul.msk.bf16.vlgmr.msra.gmra.mxu1 %vm407_vm1, %v443_v49 }
  0xcf   : > { %1467 = vmatmul.msk.bf16.vlgmr.msra.gmra.mxu2 %vm407_vm1, %v443_v49  ;;  %1476 = vmatmul.msk.bf16.vlgmr.msra.gmra.mxu3 %vm407_vm1, %v443_v49 }
  0xd0   : > { %713 = vmatpush.bf16.msra.mxu0 %v1613_v50  ;;  %738 = vmatpush.bf16.msra.mxu1 %v1615_v51 }
  0xd1   : > { %763 = vmatpush.bf16.msra.mxu2 %v1617_v52  ;;  %788 = vmatpush.bf16.msra.mxu3 %v1619_v53 }
  0xd4   : > { %714 = vmatpush.bf16.msra.mxu0 %v1612_v54  ;;  %739 = vmatpush.bf16.msra.mxu1 %v1614_v55 }
  0xd5   : > { %764 = vmatpush.bf16.msra.mxu2 %v1616_v56  ;;  %789 = vmatpush.bf16.msra.mxu3 %v1618_v57 }
  0xde   : > { %1485 = vmatmul.msk.bf16.vlgmr.msrb.gmra.mxu0 %vm407_vm1, %v443_v49  ;;  %1494 = vmatmul.msk.bf16.vlgmr.msrb.gmra.mxu1 %vm407_vm1, %v443_v49 }
  0xdf   : > { %1503 = vmatmul.msk.bf16.vlgmr.msrb.gmra.mxu2 %vm407_vm1, %v443_v49  ;;  %1512 = vmatmul.msk.bf16.vlgmr.msrb.gmra.mxu3 %vm407_vm1, %v443_v49 }
  0xee   : > { %1521 = vmatmul.msk.bf16.vlgmr.msra.gmra.mxu0 %vm407_vm1, %v443_v49  ;;  %1530 = vmatmul.msk.bf16.vlgmr.msra.gmra.mxu1 %vm407_vm1, %v443_v49 }
  0xef   : > { %1539 = vmatmul.msk.bf16.vlgmr.msra.gmra.mxu2 %vm407_vm1, %v443_v49  ;;  %1548 = vmatmul.msk.bf16.vlgmr.msra.gmra.mxu3 %vm407_vm1, %v443_v49 }
 0x14b   : > { %v516_v58 = vpop.f32.mrf.mxu0  ;;  %v541_v59 = vpop.f32.mrf.mxu1 }
 0x14c   : > { %v795_v15 = vpack.c.bf16 %v516_v58, %v516_v58  ;;  %v796_v17 = vpack.c.bf16 %v541_v59, %v541_v59 }
 0x152   : > { %v566_v60 = vpop.f32.mrf.mxu2  ;;  %v591_v61 = vpop.f32.mrf.mxu3 }
 0x153   : > { %v518_v62 = vpop.f32.mrf.mxu0  ;;  %v543_v63 = vpop.f32.mrf.mxu1  ;;  %v797_v22 = vpack.c.bf16 %v566_v60, %v566_v60  ;;  %v798_v23 = vpack.c.bf16 %v591_v61, %v591_v61 }
 0x15a   : > { %v568_v0 = vpop.f32.mrf.mxu2  ;;  %v593_v2 = vpop.f32.mrf.mxu3 }
 0x15b   : > { %v616_v3 = vpop.f32.mrf.mxu0  ;;  %v641_v4 = vpop.f32.mrf.mxu1 }
 0x15c   : > { %v799_v5 = vpack.c.bf16 %v616_v3, %v616_v3  ;;  %v800_v6 = vpack.c.bf16 %v641_v4, %v641_v4 }
 0x15e   : > { %v812_v7 = vsel %vm807_vm6, %v799_v5, 0  ;;  %v831_v8 = vsel %vm807_vm6, %v800_v6, 0 }
 0x15f   : > { %821 = vmatpush.bf16.xpose.msrb.mxu0 %v812_v7  ;;  %840 = vmatpush.bf16.xpose.msrb.mxu1 %v831_v8 }
 0x162   : > { %v666_v9 = vpop.f32.mrf.mxu2  ;;  %v691_v10 = vpop.f32.mrf.mxu3 }
 0x163   : > { %v801_v11 = vpack.c.bf16 %v666_v9, %v666_v9  ;;  %v802_v12 = vpack.c.bf16 %v691_v10, %v691_v10  ;;  %v618_v13 = vpop.f32.mrf.mxu0  ;;  %v643_v14 = vpop.f32.mrf.mxu1 }
 0x165   : > { %v850_v18 = vsel %vm807_vm6, %v801_v11, 0  ;;  %v869_v19 = vsel %vm807_vm6, %v802_v12, 0 }
 0x166   : > { %859 = vmatpush.bf16.xpose.msrb.mxu2 %v850_v18  ;;  %878 = vmatpush.bf16.xpose.msrb.mxu3 %v869_v19 }
 0x167   : > { %1549 = vmatmul.msk.bf16.vlgmr.msrb.gmra.mxu0 %vm807_vm6, %v795_v15  ;;  %1550 = vmatmul.msk.bf16.vlgmr.msrb.gmra.mxu1 %vm807_vm6, %v796_v17 }
 0x16a   : > { %v668_v20 = vpop.f32.mrf.mxu2  ;;  %v693_v21 = vpop.f32.mrf.mxu3 }
 0x16b   : > { %v716_v24 = vpop.f32.mrf.mxu0  ;;  %v741_v25 = vpop.f32.mrf.mxu1 }
 0x16c   : > { %v803_v26 = vpack.c.bf16 %v716_v24, %v716_v24  ;;  %v804_v27 = vpack.c.bf16 %v741_v25, %v741_v25 }
 0x16d   : > { %1551 = vmatmul.msk.bf16.vlgmr.msrb.gmra.mxu2 %vm807_vm6, %v797_v22  ;;  %1552 = vmatmul.msk.bf16.vlgmr.msrb.gmra.mxu3 %vm807_vm6, %v798_v23 }
 0x16e   : > { %v937_v28 = vsel %vm935_vm7, %v803_v26, 0  ;;  %v956_v29 = vsel %vm935_vm7, %v804_v27, 0  ;;  %v1013_v27 = vld [vmem:[%s1959_s20] sm:$0xf] }
 0x16f   : > { %946 = vmatpush.bf16.msra.mxu0 %v937_v28  ;;  %965 = vmatpush.bf16.msra.mxu1 %v956_v29  ;;  %v1021_v28 = vsel %vm935_vm7, %v1013_v27, 0  ;;  %v1015_v29 = vld [vmem:[%s1959_s20 + $0x8] sm:$0xf] }
 0x172   : > { %v766_v30 = vpop.f32.mrf.mxu2  ;;  %v791_v31 = vpop.f32.mrf.mxu3 }
 0x173   : > { %v805_v32 = vpack.c.bf16 %v766_v30, %v766_v30  ;;  %v806_v33 = vpack.c.bf16 %v791_v31, %v791_v31  ;;  %v718_v34 = vpop.f32.mrf.mxu0  ;;  %v743_v35 = vpop.f32.mrf.mxu1  ;;  %1030 = vmatpush.bf16.msrb.mxu0 %v1021_v28  ;;  %v1059_v30 = vsel %vm935_vm7, %v1015_v29, 0  ;;  %v1014_v31 = vld [vmem:[%s1959_s20 + $0x4] sm:$0xf]  ;;  %v1699_v28 = vld [vmem:[%s2181_s8] ss:$0 sm:$0xff] }
 0x175   : > { %v975_v36 = vsel %vm935_vm7, %v805_v32, 0  ;;  %v994_v37 = vsel %vm935_vm7, %v806_v33, 0  ;;  %v1040_v32 = vsel %vm935_vm7, %v1014_v31, 0  ;;  %v1016_v33 = vld [vmem:[%s1959_s20 + $0xc] sm:$0xf] }
 0x176   : > { %984 = vmatpush.bf16.msra.mxu2 %v975_v36  ;;  %1003 = vmatpush.bf16.msra.mxu3 %v994_v37  ;;  %v1078_v34 = vsel %vm935_vm7, %v1016_v33, 0 }
 0x177   : > { %1049 = vmatpush.bf16.msrb.mxu1 %v1040_v32 }
 0x17a   : > { %v768_v38 = vpop.f32.mrf.mxu2  ;;  %v793_v40 = vpop.f32.mrf.mxu3  ;;  %1068 = vmatpush.bf16.msrb.mxu2 %v1059_v30  ;;  %1087 = vmatpush.bf16.msrb.mxu3 %v1078_v34 }
 0x1e4   : > { %v823_v41 = vpop.f32.mrf.mxu0  ;;  %v842_v42 = vpop.f32.mrf.mxu1 }
 0x1e5   : > { %v884_v43 = vsel %vm807_vm6, %v823_v41, -inf  ;;  %v887_v46 = vsel %vm807_vm6, %v842_v42, -inf }
 0x1e6   : > { %885 = vmax.xlane.f32.xlu2 %v884_v43 }
 0x1ec   : > { %v825_v44 = vpop.f32.mrf.mxu0  ;;  %v844_v45 = vpop.f32.mrf.mxu1 }
 0x1ee   : > { %888 = vmax.xlane.f32.xlu2 %v887_v46 }
 0x1f0   : > { %v861_v47 = vpop.f32.mrf.mxu2  ;;  %v880_v48 = vpop.f32.mrf.mxu3 }
 0x1f1   : > { %v890_v49 = vsel %vm807_vm6, %v861_v47, -inf  ;;  %v893_v52 = vsel %vm807_vm6, %v880_v48, -inf }
 0x1f2   : > { %891 = vmax.xlane.f32.xlu1 %v890_v49 }
 0x1f8   : > { %v863_v50 = vpop.f32.mrf.mxu2  ;;  %v882_v51 = vpop.f32.mrf.mxu3 }
 0x1fa   : > { %894 = vmax.xlane.f32.xlu1 %v893_v52 }
 0x259   : > { %v886_v53 = vpop.xlane.xlu2 %885 }
 0x25a   : > { %v896_v54 = vsub.f32 %v823_v41, %v886_v53 }
 0x25c   : > { %v900_v55 = vmul.f32 1.442695, %v896_v54 }
 0x25e   : > { %1704 = vpow2.f32 %v900_v55 }
 0x261   : > { %v889_v57 = vpop.xlane.xlu2 %888 }
 0x262   : > { %v897_v61 = vsub.f32 %v842_v42, %v889_v57 }
 0x264   : > { %v1705_v56 = vpop.eup %1704  ;;  %v902_v63 = vmul.f32 1.442695, %v897_v61 }
 0x265   : > { %v892_v58 = vpop.xlane.xlu1 %891  ;;  %v908_v59 = vsel %vm807_vm6, %v1705_v56, 0.0 }
 0x266   : > { %v898_v60 = vsub.f32 %v861_v47, %v892_v58  ;;  %909 = vadd.xlane.f32.xlu2 %v908_v59 }
 0x268   : > { %v904_v62 = vmul.f32 1.442695, %v898_v60 }
 0x26a   : > { %1706 = vpow2.f32 %v904_v62  ;;  %v1101_v62 = vperm.slane %v2007_v39, 2 }
 0x26b   : > { %1708 = vpow2.f32 %v902_v63 }
 0x26d   : > { %v895_v0 = vpop.xlane.xlu1 %894 }
 0x26e   : > { %v899_v2 = vsub.f32 %v880_v48, %v895_v0 }
 0x270   : > { %v1707_v3 = vpop.eup %1706  ;;  %v906_v4 = vmul.f32 1.442695, %v899_v2 }
 0x271   : > { %v914_v5 = vsel %vm807_vm6, %v1707_v3, 0.0  ;;  %v1709_v6 = vpop.eup %1708 }
 0x272   : > { %1710 = vpow2.f32 %v906_v4  ;;  %915 = vadd.xlane.f32.xlu0 %v914_v5  ;;  %v911_v9 = vsel %vm807_vm6, %v1709_v6, 0.0 }
 0x278   : > { %v1711_v7 = vpop.eup %1710 }
 0x279   : > { %v917_v8 = vsel %vm807_vm6, %v1711_v7, 0.0 }
 0x27a   : > { %918 = vadd.xlane.f32.xlu1 %v917_v8  ;;  %912 = vadd.xlane.f32.xlu0 %v911_v9 }
 0x2d9   : > { %v910_v10 = vpop.xlane.xlu2 %909 }
 0x2da   : > { %1712 = vrcp.f32 %v910_v10 }
 0x2e0   : > { %v1713_v11 = vpop.eup %1712 }
 0x2e1   : > { %v924_v12 = vmul.f32 %v1713_v11, %v1705_v56 }
 0x2e3   : > { %v928_v13 = vpack.c.bf16 %v924_v12, %v924_v12 }
 0x2e5   : > { %v916_v14 = vpop.xlane.xlu0 %915  ;;  %1553 = vmatmul.msk.bf16.vlgmr.msra.gmra.mxu0 %vm807_vm6, %v928_v13 }
 0x2e6   : > { %1714 = vrcp.f32 %v916_v14 }
 0x2ec   : > { %v1715_v15 = vpop.eup %1714 }
 0x2ed   : > { %v926_v17 = vmul.f32 %v1715_v15, %v1707_v3  ;;  %v919_v18 = vpop.xlane.xlu1 %918  ;;  %v913_v19 = vpop.xlane.xlu0 %912 }
 0x2ee   : > { %1716 = vrcp.f32 %v919_v18 }
 0x2ef   : > { %v930_v20 = vpack.c.bf16 %v926_v17, %v926_v17  ;;  %1718 = vrcp.f32 %v913_v19 }
 0x2f1   : > { %1555 = vmatmul.msk.bf16.vlgmr.msra.gmra.mxu2 %vm807_vm6, %v930_v20 }
 0x2f4   : > { %v1717_v21 = vpop.eup %1716 }
 0x2f5   : > { %v1719_v22 = vpop.eup %1718  ;;  %v927_v23 = vmul.f32 %v1717_v21, %v1711_v7  ;;  %v1620_v7 = vld [vmem:[%s1964_s22] sm:$0xff] }
 0x2f6   : > { %v925_v24 = vmul.f32 %v1719_v22, %v1709_v6  ;;  %v1621_v6 = vld [vmem:[%s1964_s22 + $0x8] sm:$0xff]  ;;  %v1127_v22 = vperm.slane %v2007_v39, 3 }
 0x2f7   : > { %v931_v25 = vpack.c.bf16 %v927_v23, %v927_v23  ;;  %1161 = vmatpush.bf16.msra.mxu0 %v1621_v6 }
 0x2f8   : > { %v929_v26 = vpack.c.bf16 %v925_v24, %v925_v24  ;;  %v1129_v24 = vperm.slane %v2007_v39, 4 }
 0x2f9   : > { %1556 = vmatmul.msk.bf16.vlgmr.msra.gmra.mxu3 %vm807_vm6, %v931_v25 }
 0x2fa   : > { %1554 = vmatmul.msk.bf16.vlgmr.msra.gmra.mxu1 %vm807_vm6, %v929_v26 }
 0x2fb   : > { %1162 = vmatpush.bf16.msra.mxu0 %v1620_v7 }
 0x362   : > { %v948_v35 = vpop.f32.mrf.mxu0 }
 0x363   : > { %v1009_v36 = vpack.c.bf16 %v948_v35, %v948_v35  ;;  %v1625_v35 = vld [vmem:[%s1975_s29 + $0x18] sm:$0xff] }
 0x364   : > { %1254 = vmatpush.bf16.msra.mxu1 %v1625_v35 }
 0x365   : > { %1557 = vmatmul.msk.bf16.vlgmr.msrb.gmra.mxu0 %vm807_vm6, %v1009_v36 }
 0x36a   : > { %v950_v37 = vpop.f32.mrf.mxu0 }
 0x374   : > { %v986_v38 = vpop.f32.mrf.mxu2 }
 0x375   : > { %v1011_v40 = vpack.c.bf16 %v986_v38, %v986_v38 }
 0x377   : > { %v967_v41 = vpop.f32.mrf.mxu1  ;;  %1559 = vmatmul.msk.bf16.vlgmr.msrb.gmra.mxu2 %vm807_vm6, %v1011_v40 }
 0x378   : > { %v1010_v42 = vpack.c.bf16 %v967_v41, %v967_v41  ;;  %v1624_v41 = vld [vmem:[%s1975_s29 + $0x10] sm:$0xff] }
 0x379   : > { %1255 = vmatpush.bf16.msra.mxu1 %v1624_v41 }
 0x37a   : > { %1558 = vmatmul.msk.bf16.vlgmr.msrb.gmra.mxu1 %vm807_vm6, %v1010_v42 }
 0x37c   : > { %v988_v43 = vpop.f32.mrf.mxu2  ;;  %v1005_v44 = vpop.f32.mrf.mxu3 }
 0x37d   : > { %v1012_v45 = vpack.c.bf16 %v1005_v44, %v1005_v44 }
 0x37f   : > { %v969_v46 = vpop.f32.mrf.mxu1  ;;  %1560 = vmatmul.msk.bf16.vlgmr.msrb.gmra.mxu3 %vm807_vm6, %v1012_v45 }
 0x380   : > { %v1623_v46 = vld [vmem:[%s1975_s29 + $0x8] sm:$0xff] }
 0x381   : > { %1256 = vmatpush.bf16.msra.mxu1 %v1623_v46 }
 0x384   : > { %v1007_v47 = vpop.f32.mrf.mxu3 }
 0x3e2   : > { %v1032_v48 = vpop.f32.mrf.mxu0 }
 0x3e3   : > { %v1093_v53 = vsel %vm407_vm1, %v1032_v48, 0.0 }
 0x3ea   : > { %v1034_v49 = vpop.f32.mrf.mxu0 }
 0x3f7   : > { %v1051_v50 = vpop.f32.mrf.mxu1 }
 0x3f8   : > { %v1094_v52 = vsel %vm407_vm1, %v1051_v50, 0.0  ;;  %v1622_v50 = vld [vmem:[%s1975_s29] sm:$0xff] }
 0x3f9   : > { %v1095_v56 = vadd.f32 %v1094_v52, %v1093_v53  ;;  %1257 = vmatpush.bf16.msra.mxu1 %v1622_v50 }
 0x3fa   : > { %v1070_v51 = vpop.f32.mrf.mxu2 }
 0x3fb   : > { %v1096_v54 = vsel %vm407_vm1, %v1070_v51, 0.0 }
 0x3fc   : > { %v1097_v57 = vadd.f32 %v1096_v54, %v1095_v56 }
 0x3ff   : > { %v1053_v55 = vpop.f32.mrf.mxu1 }
 0x402   : > { %v1072_v58 = vpop.f32.mrf.mxu2  ;;  %v1089_v59 = vpop.f32.mrf.mxu3 }
 0x403   : > { %v1098_v60 = vsel %vm407_vm1, %v1089_v59, 0.0 }
 0x404   : > { %v1099_v61 = vadd.f32 %v1098_v60, %v1097_v57 }
 0x406   : > { %v1100_v63 = vadd.f32 %v1099_v61, %v1979_v1 }
 0x408   : > { %v2074_v0 = vadd.f32 %v1101_v62, %v1100_v63 }
 0x40a   : > { %v1091_v2 = vpop.f32.mrf.mxu3  ;;  %v1103_v3 = vsel %vm407_vm1, %v2074_v0, 0.0  ;;  %v1107_v4 = vmul.f32 %v2074_v0, %v2074_v0 }
 0x40b   : > { %1104 = vadd.xlane.f32.xlu1 %v1103_v3 }
 0x40c   : > { %v1108_v5 = vsel %vm407_vm1, %v1107_v4, 0.0 }
 0x40d   : > { %1109 = vadd.xlane.f32.xlu2 %v1108_v5 }
 0x47e   : > { %v1105_v8 = vpop.xlane.xlu1 %1104 }
 0x47f   : > { %v1106_v9 = vmul.f32 %v1105_v8, %v1990_v16 }
 0x480   : > { %v1110_v1 = vpop.xlane.xlu2 %1109 }
 0x481   : > { %v1112_v10 = vmul.f32 %v1106_v9, %v1106_v9  ;;  %v1111_v11 = vmul.f32 %v1110_v1, %v1990_v16  ;;  %v1114_v21 = vsub.f32 %v2074_v0, %v1106_v9 }
 0x483   : > { %v1113_v12 = vsub.f32 %v1111_v11, %v1112_v10 }
 0x485   : > { %v1115_v13 = vadd.f32 1e-05, %v1113_v12 }
 0x487   : > { %1720 = vrsqrt.f32 %v1115_v13  ;;  %vm1122_vm9 = vweird.f32 %v1115_v13 }
 0x48d   : > { %v1721_v14 = vpop.eup %1720 }
 0x48e   : > { %v1117_v15 = vmul.f32 %v1721_v14, %v1115_v13  ;;  %vm1123_vm8 = vweird.f32 %v1721_v14 }
 0x48f   : > { %vm1124_vm10 = vmor %vm1122_vm9, %vm1123_vm8 }
 0x490   : > { %v1118_v17 = vmul.f32 %v1721_v14, %v1117_v15 }
 0x492   : > { %v1119_v18 = vmul.f32 0.5, %v1118_v17 }
 0x494   : > { %v1120_v19 = vsub.f32 1.5, %v1119_v18 }
 0x496   : > { %v1121_v20 = vmul.f32 %v1721_v14, %v1120_v19 }
 0x498   : > { %v1125_v23 = vsel %vm1124_vm10, %v1721_v14, %v1121_v20  ;;  %v1221_v14 = vperm.slane %v2007_v39, 5 }
 0x499   : > { %v1126_v16 = vmul.f32 %v1125_v23, %v1114_v21 }
 0x49b   : > { %v1128_v25 = vmul.f32 %v1127_v22, %v1126_v16 }
 0x49d   : > { %v1130_v26 = vadd.f32 %v1129_v24, %v1128_v25 }
 0x49f   : > { %v1131_v27 = vpack.c.bf16 %v1130_v26, %v1130_v26 }
 0x4a1   : > { %1569 = vmatmul.msk.bf16.vlgmr.msra.gmra.mxu0 %vm407_vm1, %v1131_v27 }
 0x51e   : > { %v1164_v29 = vpop.f32.mrf.mxu0 }
 0x51f   : > { %v1165_v30 = vadd.f32 %v1699_v28, %v1164_v29 }
 0x521   : > { %v1169_v31 = vmul.f32 0.70710677, %v1165_v30  ;;  %v1168_v10 = vmul.f32 0.5, %v1165_v30 }
 0x523   : > { %v1170_v32 = vmul.f32 %v1169_v31, %v1169_v31 }
 0x525   : > { %v1171_v33 = vmin.f32 %v1170_v32, 16.0 }
 0x526   : > { %v1166_v34 = vpop.f32.mrf.mxu0 }
 0x527   : > { %v1172_v36 = vmul.f32 2.1237322e-06, %v1171_v33  ;;  %v1183_v37 = vmul.f32 3.8918573e-05, %v1171_v33 }
 0x529   : > { %v1173_v38 = vadd.f32 0.00028619796, %v1172_v36  ;;  %v1184_v40 = vadd.f32 0.001143296, %v1183_v37 }
 0x52b   : > { %v1174_v42 = vmul.f32 %v1173_v38, %v1171_v33  ;;  %v1185_v43 = vmul.f32 %v1184_v40, %v1171_v33 }
 0x52d   : > { %v1186_v44 = vadd.f32 0.014752088, %v1185_v43  ;;  %v1175_v45 = vadd.f32 0.0036580483, %v1174_v42 }
 0x52f   : > { %v1187_v47 = vmul.f32 %v1186_v44, %v1171_v33  ;;  %v1176_v49 = vmul.f32 %v1175_v45, %v1171_v33 }
 0x531   : > { %v1188_v48 = vadd.f32 0.112945676, %v1187_v47  ;;  %v1177_v53 = vadd.f32 0.05243302, %v1176_v49 }
 0x533   : > { %v1189_v51 = vmul.f32 %v1188_v48, %v1171_v33  ;;  %v1178_v56 = vmul.f32 %v1177_v53, %v1171_v33 }
 0x535   : > { %v1190_v52 = vadd.f32 0.4994258, %v1189_v51  ;;  %v1179_v57 = vadd.f32 0.18741608, %v1178_v56 }
 0x537   : > { %v1191_v54 = vmul.f32 %v1190_v52, %v1171_v33  ;;  %v1180_v59 = vmul.f32 %v1179_v57, %v1171_v33 }
 0x539   : > { %v1192_v55 = vadd.f32 1.0, %v1191_v54  ;;  %v1181_v63 = vadd.f32 1.1283791, %v1180_v59 }
 0x53b   : > { %1722 = vrcp.f32 %v1192_v55  ;;  %v1204_v62 = vand.u32 2147483648, %v1192_v55  ;;  %v1202_v3 = vand.u32 2147483647, %v1192_v55  ;;  %vm1198_vm12 = vweird.f32 %v1192_v55 }
 0x53c   : > { %v1182_v6 = vmul.f32 %v1181_v63, %v1169_v31 }
 0x53d   : > { %v1205_v5 = vor.u32 1.1754944e-38, %v1204_v62  ;;  %vm1203_vm14 = vcmp.eq.f32.partialorder %v1202_v3, 8.507059e+37 }
 0x541   : > { %v1723_v58 = vpop.eup %1722 }
 0x542   : > { %v1194_v60 = vmul.f32 %v1723_v58, %v1192_v55  ;;  %vm1199_vm11 = vweird.f32 %v1723_v58 }
 0x543   : > { %vm1200_vm13 = vmor %vm1198_vm12, %vm1199_vm11 }
 0x544   : > { %v1195_v61 = vsub.f32 1.0, %v1194_v60 }
 0x546   : > { %v1196_v2 = vmul.f32 %v1723_v58, %v1195_v61 }
 0x548   : > { %v1197_v4 = vadd.f32 %v1723_v58, %v1196_v2 }
 0x54a   : > { %v1201_v7 = vsel %vm1200_vm13, %v1723_v58, %v1197_v4 }
 0x54b   : > { %v1206_v8 = vsel %vm1203_vm14, %v1205_v5, %v1201_v7 }
 0x54c   : > { %v1207_v9 = vmul.f32 %v1206_v8, %v1182_v6 }
 0x54e   : > { %v1570_v1 = vclamps-f32 %v1207_v9, 1.0 }
 0x550   : > { %v1210_v11 = vadd.f32 1.0, %v1570_v1 }
 0x552   : > { %v1211_v12 = vmul.f32 %v1210_v11, %v1168_v10 }
 0x554   : > { %v1212_v13 = vpack.c.bf16 %v1211_v12, %v1211_v12 }
 0x556   : > { %1587 = vmatmul.msk.bf16.vlgmr.msra.gmra.mxu1 %vm1246_vm15, %v1212_v13 }
 0x5d3   : > { %v1259_v15 = vpop.f32.mrf.mxu1 }
 0x5d4   : > { %v1260_v17 = vadd.f32 %v1259_v15, %v1221_v14 }
 0x5d6   : > { %v1263_v18 = vadd.f32 %v1260_v17, %v2074_v0 }
 0x5d7   : > { %1268 = sbr.rel (%p1588_p1) target bundleno = 1501 (0x5dd), region = 56 }
 0x5d8   : > { %1264 = vst.msk [vmem:[#allocation2] sm:$0xff] %vm407_vm1, %v1263_v18 }
 0x5db   : > { %v1261_v19 = vpop.f32.mrf.mxu1 }
 0x5dc   : > { %1269 = vst.msk [vmem:[%s365_s0] sm:$0xff] %vm407_vm1, %v1263_v18 }
 0x5dd PF: > { %s1590_s29 = sshll.u32 %s1806_s28, 3  ;;  %s1283_s21 = sshll.u32 %s365_s0, 4  ;;  %s1284_s21 = int_to_ptr.vmem [resolvable:$true] %s1283_s21 }
 0x5de   : > { %s1281_s18 = scalar_lea.hbm %s2158_s7, %s1590_s29  ;;  %s2182_s27 = sand.u32 1, %s1794_s25  }
 0x5df   : > { %s1285_s10 = sshll.u32 %s1281_s18, 4  ;;  %s1271_s20 = scalar_lea.sflag [#allocation4], %s2182_s27  ;;  %s1286_s10 = int_to_ptr.hbm [resolvable:$true] %s1285_s10 }
 0x5e0   : > { %s1738_s23 = sshra.s32 %s1286_s10, 4  ;;  %s1744_s12 = scalar_lea.hbm %s2158_s7, 16  ;;  %s1739_s23 = int_to_ptr.hbm [resolvable:$true] %s1738_s23 }
 0x5e1   : > { %s1740_s22 = scalar_lea.hbm %s1739_s23, 8  ;;  %p1745_p6 = scmp.lt.s32.totalorder %s1739_s23, %s2158_s7 }
 0x5e2   : > { %p1741_p2 = scmp.ne.s32.totalorder %s1739_s23, %s1740_s22  ;;  %p1746_p7 = scmp.lt.s32.totalorder %s1744_s12, %s1740_s22 }
 0x5e4   : > { %p1742_p4 = pnand %p1741_p2, %p1910_p3  ;;  %p1747_p8 = por %p1746_p7, %p1745_p6 }
 0x5e6   : > { %p1743_p5 = pneg %p1742_p4 }
 0x5e8   : > { %p1748_p10 = pnand %p1747_p8, %p1743_p5 }
 0x5ea   : > { %1751 = shalt.err (!%p1748_p10)
}
 0x5eb   : > { %1627 = dma.vmem_to_hbm [thread:$0]  (%p1910_p3), %s1284_s21, 128, %s1286_s10, %s1271_s20  }
 0x5ec PF: > { %s2183_s0 = sld [smem:[#allocation10_spill]] }
 0x5ed   : > { %s2184_s19 = sld [smem:[#allocation6_spill]] }
 0x5f2   : > { %p1633_p11 = scmp.ge.s32.totalorder %s2183_s0, 2 }
 0x5f3   : > { %s1297_s11 = sand.u32 1, %s2184_s19  }
 0x5f4   : > { %p1630_p12 = pnand %p1633_p11, %p1920_p9  ;;  %s1298_s24 = scalar_lea.sflag [#allocation4], %s1297_s11 }
 0x5f6   : > { %p1631_p13 = pneg %p1630_p12 }
 0x5f8   : > { %1785 = dma.done.wait (%p1631_p13), %s1298_s24, 128  }
 0x5f9   : > { %1787 = vsyncadd (%p1631_p13), %s1298_s24, 4294967168  ;;  %s20_s8 = sadd.s32 1, %s2183_s0   ;;  %s2186_s26 = sld [smem:[#allocation7_spill]] }
 0x5fa   : > { %p17_p0 = scmp.ge.s32.totalorder %s20_s8, 6   ;;  %s2187_s29 = sld [smem:[#allocation14_spill]] }
 0x5fb   : > { %s2188_s27 = sld [smem:[#allocation8_spill]]  ;;  %s2192_s24 = smov %s1794_s25 }
 0x5fc   : > { %s2189_s28 = sld [smem:[#allocation9_spill]] }
 0x5fd   : > { %s2190_s13 = sld [smem:[#allocation11_spill]] }
 0x5fe   : > { %s2191_s30 = sld [smem:[#allocation12_spill]] }
 0x5ff   : > { %s2193_s25 = smov %s2186_s26  ;;  %19 = sbr.rel (!%p17_p0) target bundleno = 7 (0x7), region = 109 }
 0x600   : > { %s2194_s26 = smov %s2187_s29 }
 0x603   : > { %s2195_s29 = smov %s2190_s13 }
 0x604   :  { %1304 = vsyncpa [#allocation4], 1 }
 0x605   :  { %1306 = vsyncpa [#allocation4 + $0x1], 1 }

</bundles_post_ra>
